<compile_context>
chip_gen: v7x
topology: tpu7x:2x2x1
jax: 0.10.0
libtpu: 0.0.40
codegen_flags: <defaults>
</compile_context>

<pallas_src>
import functools

import jax
import jax.numpy as jnp
from jax import lax
from jax.experimental import pallas as pl
from jax.experimental.pallas import tpu as pltpu

_HIGH = lax.Precision.HIGHEST            # pure-JAX reference only


def _round_up(v, m):
    return (v + m - 1) // m * m


def _vmem_limit_bytes():
    """Scoped VMEM budget: half of physical, clamped to [32 MiB, 96 MiB]."""
    try:
        cap = pltpu.get_tpu_info().vmem_capacity_bytes
    except Exception:                     # pragma: no cover - conservative fallback
        return 32 * 1024 * 1024
    return int(min(max(cap // 2, 32 * 1024 * 1024), 96 * 1024 * 1024))


# ---------------------------------------------------------------------------
# Kernel A: H-pass of the separable bilinear resize (one matmul per image).
# Ahp already contains the zero rows for the 3x3 conv's top/bottom halo and
# the row-tile alignment padding, so no jnp.pad is ever needed downstream.
# ---------------------------------------------------------------------------
def _hpass_kernel(a_ref, x_ref, o_ref):
    o_ref[...] = jnp.dot(a_ref[...], x_ref[...],
                         preferred_element_type=jnp.float32).astype(o_ref.dtype)


# ---------------------------------------------------------------------------
# Kernel B: fused  (bilinear W-pass  +  low-level 1x1 conv + BN + ReLU
#                   +  3x3 conv over the rebuilt 304-ch concat + BN + ReLU)
# One grid point = one (image, th-row) tile.  Output rows/cols beyond the real
# image are masked to exact zeros so conv #2 can use them as halo directly.
# ---------------------------------------------------------------------------
def _dec_conv1_kernel(t_ref, low_ref, awp_ref, w1_ref, s1_ref, b1_ref,
                      w3_ref, s3_ref, b3_ref, o_ref, slab,
                      *, th, hl, wl, wout):
    ib = pl.program_id(1)
    r0 = ib * th                                   # first output row of this tile
    wslab = wout + 2
    cg = 384                                       # per-kx slab block: 256 x | 48 llf | 80 zero

    # Zero the llf + pad channel block once per tile (x channels are fully
    # rewritten every row, so only this block needs explicit zeroing).
    slab[:, :, 256:] = jnp.zeros((th + 2, wslab, cg - 256), slab.dtype)

    awp = awp_ref[...]
    w1 = w1_ref[...]
    s1 = s1_ref[...]
    b1 = b1_ref[...]

    # Build the (th+2)-row input slab: W-pass of the upsample + fused llf 1x1.
    for rr in range(th + 2):
        g = r0 + rr                                # padded row coord (g-1 = input row)
        # --- upsampled-x group: width interpolation of one H-pass row -------
        trow = t_ref[g]                            # (Wx, 256) bf16, zero for halo rows
        xrow = jnp.dot(awp, trow, preferred_element_type=jnp.float32)
        slab[rr, :, 0:256] = xrow.astype(slab.dtype)
        # --- low-level group: 1x1 conv (Cl->48) + BN + ReLU, in-kernel -------
        lidx = jnp.clip(g - 1, 0, hl - 1)
        lrow = low_ref[lidx].astype(jnp.bfloat16)  # (Wl, Cl)
        lval = jnp.dot(lrow, w1, preferred_element_type=jnp.float32)
        lval = jnp.maximum(lval * s1 + b1, 0.0)
        valid = jnp.logical_and(g >= 1, g <= hl)   # zero the conv halo rows
        lval = jnp.where(valid, lval, 0.0)
        slab[rr, 1:1 + wl, 256:304] = lval.astype(slab.dtype)

    # 3x3 conv: kx folded into K  ->  one K=1152 dot per ky (3 acc updates).
    m = th * wout
    acc = None
    for ky in range(3):
        p = jnp.concatenate(
            [slab[ky:ky + th, kx:kx + wout, :] for kx in range(3)], axis=-1)
        d = jnp.dot(p.reshape(m, 3 * cg), w3_ref[ky],
                    preferred_element_type=jnp.float32)
        acc = d if acc is None else acc + d

    y = jnp.maximum(acc * s3_ref[...] + b3_ref[...], 0.0)
    y = y.reshape(th, wout, 256)
    # Mask padding rows/cols to exact zero: they are conv #2's zero halo.
    rows = r0 + lax.broadcasted_iota(jnp.int32, (th, wout, 1), 0)
    cols = lax.broadcasted_iota(jnp.int32, (th, wout, 1), 1)
    y = jnp.where(jnp.logical_and(rows < hl, cols < wl), y, 0.0)
    y = y.astype(o_ref.dtype)

    # Store with the +-1 column halo baked in (lane-dense 256-ch stores).
    o_ref[:, 1:1 + wout, :] = y
    zcol = jnp.zeros((th, 1, 256), o_ref.dtype)
    o_ref[:, 0:1, :] = zcol
    o_ref[:, 1 + wout:, :] = zcol


# ---------------------------------------------------------------------------
# Kernel C: 3x3 conv #2 + BN + ReLU  +  fused 1x1 classifier (bias, 128 lanes).
# The overlapping (th+2)-row input window is fetched with manual DMA from HBM
# (pl.ANY); top/bottom halo rows are single-row DMAs or zeros at the edges.
# ---------------------------------------------------------------------------
def _dec_conv2_kernel(z_ref, w3_ref, s3_ref, b3_ref, wcls_ref, bcls_ref,
                      o_ref, slab, sem, *, th, wout):
    nb = pl.program_id(0)
    ib = pl.program_id(1)
    nib = pl.num_programs(1)
    r0 = ib * th
    wslab = wout + 2

    main = pltpu.make_async_copy(z_ref.at[nb, pl.ds(r0, th)],
                                 slab.at[pl.ds(1, th)], sem.at[0])
    main.start()

    zrow = jnp.zeros((1, wslab, 256), slab.dtype)

    @pl.when(ib > 0)
    def _():
        c = pltpu.make_async_copy(z_ref.at[nb, pl.ds(r0 - 1, 1)],
                                  slab.at[pl.ds(0, 1)], sem.at[1])
        c.start()
        c.wait()

    @pl.when(ib == 0)
    def _():
        slab[0:1] = zrow

    @pl.when(ib < nib - 1)
    def _():
        c = pltpu.make_async_copy(z_ref.at[nb, pl.ds(r0 + th, 1)],
                                  slab.at[pl.ds(th + 1, 1)], sem.at[2])
        c.start()
        c.wait()

    @pl.when(ib == nib - 1)
    def _():
        slab[th + 1:th + 2] = zrow

    main.wait()

    m = th * wout
    acc = None
    for ky in range(3):
        p = jnp.concatenate(
            [slab[ky:ky + th, kx:kx + wout, :] for kx in range(3)], axis=-1)
        d = jnp.dot(p.reshape(m, 3 * 256), w3_ref[ky],
                    preferred_element_type=jnp.float32)
        acc = d if acc is None else acc + d

    y = jnp.maximum(acc * s3_ref[...] + b3_ref[...], 0.0).astype(jnp.bfloat16)
    out = jnp.dot(y, wcls_ref[...], preferred_element_type=jnp.float32)
    out = out + bcls_ref[...]
    o_ref[...] = out.reshape(th, wout, -1).astype(o_ref.dtype)


# ---------------------------------------------------------------------------
# Glue: bilinear weights (align_corners=True), BN fold, params, forward.
# ---------------------------------------------------------------------------
def _interp_matrix(out_size, in_size):
    """1-D bilinear interp matrix, align_corners=True (torch semantics)."""
    if in_size == 1:
        return jnp.ones((out_size, 1), jnp.float32)
    scale = 0.0 if out_size == 1 else (in_size - 1) / (out_size - 1)
    src = jnp.arange(out_size, dtype=jnp.float32) * scale
    p0 = jnp.clip(jnp.floor(src), 0, in_size - 1)
    p1 = jnp.clip(p0 + 1, 0, in_size - 1)
    w = src - p0
    oh0 = jax.nn.one_hot(p0.astype(jnp.int32), in_size, dtype=jnp.float32)
    oh1 = jax.nn.one_hot(p1.astype(jnp.int32), in_size, dtype=jnp.float32)
    return (1.0 - w)[:, None] * oh0 + w[:, None] * oh1


def _bn_fold(c, eps=1e-5):
    # Module init: gamma=1, beta=0; eval-mode running stats: mean=0, var=1.
    gamma = jnp.ones((c,), jnp.float32)
    beta = jnp.zeros((c,), jnp.float32)
    mean = jnp.zeros((c,), jnp.float32)
    var = jnp.ones((c,), jnp.float32)
    scale = gamma / jnp.sqrt(var + eps)
    shift = beta - mean * scale
    return scale.reshape(1, c), shift.reshape(1, c)


def init_params(key, num_classes, low_level_inplanes):
    k1, k2, k3, k4, k5 = jax.random.split(key, 5)
    cl = low_level_inplanes
    p = {"num_classes": num_classes}
    # conv1: 1x1, Cl -> 48, no bias (kaiming_normal)
    p["w1"] = (jax.random.normal(k1, (cl, 48), jnp.float32)
               * jnp.sqrt(2.0 / cl)).astype(jnp.bfloat16)
    p["s1"], p["b1"] = _bn_fold(48)
    # last_conv[0]: 3x3, 304 -> 256, no bias.  Stored kx-folded with the
    # per-kx channel block padded to 384 = [256 x | 48 llf | 80 zero].
    w3a = (jax.random.normal(k2, (3, 3, 304, 256), jnp.float32)
           * jnp.sqrt(2.0 / (9 * 304)))
    w3p = jnp.zeros((3, 3, 384, 256), jnp.float32).at[:, :, :304, :].set(w3a)
    p["w3c"] = w3p.reshape(3, 3 * 384, 256).astype(jnp.bfloat16)
    p["s3a"], p["b3a"] = _bn_fold(256)
    # last_conv[4]: 3x3, 256 -> 256, no bias; kx-folded to (3, 768, 256).
    w3b = (jax.random.normal(k3, (3, 3, 256, 256), jnp.float32)
           * jnp.sqrt(2.0 / (9 * 256)))
    p["w3b_r"] = w3b.reshape(3, 768, 256).astype(jnp.bfloat16)
    p["s3b"], p["b3b"] = _bn_fold(256)
    # last_conv[8]: 1x1, 256 -> num_classes, with bias; padded to 128 lanes.
    ncp = 128
    wcls = jax.random.normal(k4, (256, num_classes), jnp.float32) * jnp.sqrt(2.0 / 256)
    bound = 1.0 / jnp.sqrt(256.0)
    bcls = jax.random.uniform(k5, (num_classes,), jnp.float32,
                              minval=-bound, maxval=bound)
    p["wcls"] = jnp.zeros((256, ncp), jnp.bfloat16).at[:, :num_classes].set(
        wcls.astype(jnp.bfloat16))
    p["bcls"] = jnp.zeros((1, ncp), jnp.float32).at[0, :num_classes].set(bcls)
    return p


def decoder_forward(x, low, p, *, th=16):
    """x: (N, Hx, Wx, 256) NHWC; low: (N, Hl, Wl, low_level_inplanes) NHWC."""
    n, hx, wx, cx = x.shape
    nl, hl, wl, cl = low.shape
    assert cx == 256 and nl == n
    nc = p["num_classes"]
    ncp = p["wcls"].shape[1]

    th = int(max(1, min(th, _round_up(hl, 8))))    # sweep {16, 32, 64} on big inputs
    hp = _round_up(hl, th)
    wout = _round_up(wl, 8)                        # lane/sublane-friendly output width
    wslab = wout + 2
    vmem_limit = _vmem_limit_bytes()

    # Padded separable-bilinear matrices: zero rows implement the 3x3 conv's
    # spatial zero-halo and the alignment padding, so no jnp.pad is needed.
    ahp = jnp.zeros((hp + 2, hx), jnp.float32).at[1:1 + hl].set(
        _interp_matrix(hl, hx)).astype(jnp.bfloat16)
    awp = jnp.zeros((wslab, wx), jnp.float32).at[1:1 + wl].set(
        _interp_matrix(wl, wx)).astype(jnp.bfloat16)

    # --- kernel A: H-pass of the bilinear resize (tiny intermediate) --------
    x_flat = x.astype(jnp.bfloat16).reshape(n, hx, wx * cx)
    t = pl.pallas_call(
        _hpass_kernel,
        out_shape=jax.ShapeDtypeStruct((n, hp + 2, wx * cx), jnp.bfloat16),
        grid=(n,),
        in_specs=[pl.BlockSpec((hp + 2, hx), lambda i: (0, 0)),
                  pl.BlockSpec((None, hx, wx * cx), lambda i: (i, 0, 0))],
        out_specs=pl.BlockSpec((None, hp + 2, wx * cx), lambda i: (i, 0, 0)),
        compiler_params=pltpu.CompilerParams(
            dimension_semantics=("parallel",), vmem_limit_bytes=vmem_limit),
    )(ahp, x_flat)
    t4 = t.reshape(n, hp + 2, wx, cx)              # free metadata reshape

    # --- kernel B: fused upsample W-pass + llf 1x1 + 3x3 conv #1 ------------
    nib = hp // th
    conv1 = functools.partial(_dec_conv1_kernel, th=th, hl=hl, wl=wl, wout=wout)
    z = pl.pallas_call(
        conv1,
        out_shape=jax.ShapeDtypeStruct((n, hp, wslab, 256), jnp.bfloat16),
        grid=(n, nib),
        in_specs=[
            pl.BlockSpec((None, hp + 2, wx, cx), lambda nb, ib: (nb, 0, 0, 0)),
            pl.BlockSpec((None, hl, wl, cl), lambda nb, ib: (nb, 0, 0, 0)),
            pl.BlockSpec((wslab, wx), lambda nb, ib: (0, 0)),
            pl.BlockSpec((cl, 48), lambda nb, ib: (0, 0)),
            pl.BlockSpec((1, 48), lambda nb, ib: (0, 0)),
            pl.BlockSpec((1, 48), lambda nb, ib: (0, 0)),
            pl.BlockSpec((3, 1152, 256), lambda nb, ib: (0, 0, 0)),
            pl.BlockSpec((1, 256), lambda nb, ib: (0, 0)),
            pl.BlockSpec((1, 256), lambda nb, ib: (0, 0)),
        ],
        out_specs=pl.BlockSpec((None, th, wslab, 256),
                               lambda nb, ib: (nb, ib, 0, 0)),
        scratch_shapes=[pltpu.VMEM((th + 2, wslab, 384), jnp.bfloat16)],
        compiler_params=pltpu.CompilerParams(
            dimension_semantics=("parallel", "parallel"),
            vmem_limit_bytes=vmem_limit),
    )(t4, low, awp, p["w1"], p["s1"], p["b1"], p["w3c"], p["s3a"], p["b3a"])

    # --- kernel C: 3x3 conv #2 + BN + ReLU + fused classifier ---------------
    conv2 = functools.partial(_dec_conv2_kernel, th=th, wout=wout)
    out = pl.pallas_call(
        conv2,
        out_shape=jax.ShapeDtypeStruct((n, hp, wout, ncp), jnp.bfloat16),
        grid=(n, nib),
        in_specs=[
            pl.BlockSpec(memory_space=pl.ANY),           # z stays in HBM, manual DMA
            pl.BlockSpec((3, 768, 256), lambda nb, ib: (0, 0, 0)),
            pl.BlockSpec((1, 256), lambda nb, ib: (0, 0)),
            pl.BlockSpec((1, 256), lambda nb, ib: (0, 0)),
            pl.BlockSpec((256, ncp), lambda nb, ib: (0, 0)),
            pl.BlockSpec((1, ncp), lambda nb, ib: (0, 0)),
        ],
        out_specs=pl.BlockSpec((None, th, wout, ncp),
                               lambda nb, ib: (nb, ib, 0, 0)),
        scratch_shapes=[pltpu.VMEM((th + 2, wslab, 256), jnp.bfloat16),
                        pltpu.SemaphoreType.DMA((3,))],
        compiler_params=pltpu.CompilerParams(
            dimension_semantics=("parallel", "parallel"),
            vmem_limit_bytes=vmem_limit),
    )(z, p["w3b_r"], p["s3b"], p["b3b"], p["wcls"], p["bcls"])

    # Padded rows/cols/classes are garbage-free zeros/ignored; slice them off.
    return out[:, :hl, :wl, :nc].astype(jnp.float32)


# ---------------------------------------------------------------------------
# Pure-JAX reference (mirrors the kernels' bf16-in / f32-accumulate numerics)
# ---------------------------------------------------------------------------
def reference_forward(x, low, p):
    f32, bf16 = jnp.float32, jnp.bfloat16
    n, hx, wx, cx = x.shape
    _, hl, wl, cl = low.shape
    nc = p["num_classes"]
    xb = x.astype(bf16).astype(f32)
    lowb = low.astype(bf16).astype(f32)

    llf = jnp.einsum("nhwc,co->nhwo", lowb, p["w1"].astype(f32), precision=_HIGH)
    llf = jnp.maximum(llf * p["s1"][0] + p["b1"][0], 0.0).astype(bf16)

    ah = _interp_matrix(hl, hx).astype(bf16).astype(f32)
    aw = _interp_matrix(wl, wx).astype(bf16).astype(f32)
    t = jnp.einsum("ip,npqc->niqc", ah, xb, precision=_HIGH).astype(bf16).astype(f32)
    up = jnp.einsum("jq,niqc->nijc", aw, t, precision=_HIGH).astype(bf16)

    cat = jnp.concatenate([up, llf], axis=-1).astype(f32)
    w3a = p["w3c"].reshape(3, 3, 384, 256)[:, :, :304, :].astype(f32)
    w3b = p["w3b_r"].reshape(3, 3, 256, 256).astype(f32)

    def c3(xin, w, s, b):
        y = lax.conv_general_dilated(
            xin, w, (1, 1), "SAME",
            dimension_numbers=("NHWC", "HWIO", "NHWC"), precision=_HIGH)
        return jnp.maximum(y * s[0] + b[0], 0.0)

    z = c3(cat, w3a, p["s3a"], p["b3a"]).astype(bf16).astype(f32)
    y = c3(z, w3b, p["s3b"], p["b3b"]).astype(bf16).astype(f32)
    out = jnp.einsum("nhwc,co->nhwo", y, p["wcls"].astype(f32),
                     precision=_HIGH) + p["bcls"][0]
    out = out.astype(bf16).astype(f32)             # kernel stores logits in bf16
    return out[..., :nc]


# ---------------------------------------------------------------------------
if __name__ == "__main__":
    num_classes = 8
    low_level_inplanes = 24          # backbone='mobilenet'

    key = jax.random.PRNGKey(0)
    kp, kx, kl = jax.random.split(key, 3)
    params = init_params(kp, num_classes, low_level_inplanes)

    # x (ASPP output): torch NCHW (2, 256, 4, 4)  -> NHWC (2, 4, 4, 256)
    x = jax.random.normal(kx, (2, 4, 4, 256), jnp.float32)
    # low_level_feat: torch NCHW (2, 24, 8, 8)    -> NHWC (2, 8, 8, 24)
    low = jax.random.normal(kl, (2, 8, 8, 24), jnp.float32)

    out = jax.block_until_ready(decoder_forward(x, low, params))
    assert out.shape == (2, 8, 8, num_classes), out.shape

    ref = reference_forward(x, low, params)
    if not jnp.allclose(out, ref, rtol=1e-2, atol=1e-2):
        raise AssertionError(
            f"mismatch vs reference: max abs diff "
            f"{float(jnp.max(jnp.abs(out - ref)))}")

    print("KERNEL_OK")
</pallas_src>

<mosaic_0001>
module attributes {stable_mosaic.version = 11 : i64} {
  func.func @_hpass_kernel(%arg0: i32, %arg1: memref<10x4xbf16, #tpu.memory_space<vmem>>, %arg2: memref<1x4x1024xbf16, #tpu.memory_space<vmem>>, %arg3: memref<1x10x1024xbf16, #tpu.memory_space<vmem>>) attributes {dimension_semantics = [#tpu.dimension_semantics<parallel>], iteration_bounds = array<i64: 2>, scalar_prefetch = 0 : i64, scratch_operands = 0 : i64, tpu.core_type = #tpu.core_type<tc>, window_params = [{pipeline_mode = #tpu.pipeline_mode<synchronous>, transform_indices = @transform_0, window_bounds = array<i64: 10, 4>}, {transform_indices = @transform_1, window_bounds = array<i64: 1, 4, 1024>}, {transform_indices = @transform_2, window_bounds = array<i64: 1, 10, 1024>}]} {
    %c0 = arith.constant 0 : index
    %c0_0 = arith.constant 0 : index
    %0 = vector.load %arg1[%c0, %c0_0] : memref<10x4xbf16, #tpu.memory_space<vmem>>, vector<10x4xbf16>
    %c0_1 = arith.constant 0 : index
    %c0_2 = arith.constant 0 : index
    %c0_3 = arith.constant 0 : index
    %1 = vector.load %arg2[%c0_1, %c0_2, %c0_3] : memref<1x4x1024xbf16, #tpu.memory_space<vmem>>, vector<1x4x1024xbf16>
    %2 = vector.shape_cast %1 : vector<1x4x1024xbf16> to vector<4x1024xbf16>
    %cst = arith.constant dense<0.000000e+00> : vector<10x1024xf32>
    %3 = tpu.matmul %0, %2, %cst {dimension_numbers = #tpu.dot_dimension_numbers<[1], [0], [0], [1], [0, 0, 1, 1], [], []>} : vector<10x4xbf16>, vector<4x1024xbf16>, vector<10x1024xf32> -> vector<10x1024xf32>
    %4 = arith.truncf %3 : vector<10x1024xf32> to vector<10x1024xbf16>
    %c0_4 = arith.constant 0 : index
    %c0_5 = arith.constant 0 : index
    %c0_6 = arith.constant 0 : index
    %5 = vector.load %arg3[%c0_4, %c0_5, %c0_6] : memref<1x10x1024xbf16, #tpu.memory_space<vmem>>, vector<1x10x1024xbf16>
    %6 = vector.shape_cast %5 : vector<1x10x1024xbf16> to vector<10x1024xbf16>
    %7 = vector.shape_cast %4 : vector<10x1024xbf16> to vector<1x10x1024xbf16>
    tpu.vector_store %arg3[%c0_4, %c0_5, %c0_6], %7 {strides = array<i32>} : memref<1x10x1024xbf16, #tpu.memory_space<vmem>>, vector<1x10x1024xbf16>,
    return
  }
  func.func @transform_0(%arg0: i32) -> (i32, i32) {
    %c0_i32 = arith.constant 0 : i32
    %c0_i32_0 = arith.constant 0 : i32
    %c0_i32_1 = arith.constant 0 : i32
    return %c0_i32, %c0_i32_0 : i32, i32
  }
  func.func @transform_1(%arg0: i32) -> (i32, i32, i32) {
    %c0_i32 = arith.constant 0 : i32
    %c0_i32_0 = arith.constant 0 : i32
    %c0_i32_1 = arith.constant 0 : i32
    return %arg0, %c0_i32, %c0_i32_0 : i32, i32, i32
  }
  func.func @transform_2(%arg0: i32) -> (i32, i32, i32) {
    %c0_i32 = arith.constant 0 : i32
    %c0_i32_0 = arith.constant 0 : i32
    %c0_i32_1 = arith.constant 0 : i32
    return %arg0, %c0_i32, %c0_i32_0 : i32, i32, i32
  }
}

</mosaic_0001>

<bundles_post_ra>
// kernel: tpu_custom_call.1
= control target key start
LH: loop header
LB: loop body
LE: loop exit
PB: predicated region body
PF: predicated region fallthrough
CT: control target
= control target key end

     0   :  { %7 = vsyncpa [#allocation3], 0  ;;  %s827_s0 = inlined_call_operand.vmem [shape: bf16[10,4], index: 0, kind: input, shape index: {}]   ;;  %s828_s1 = inlined_call_operand.hbm [shape: bf16[2,4,1024], index: 1, kind: input, shape index: {}]   ;;  %s829_s2 = inlined_call_operand.vmem [shape: bf16[2,10,1024], index: 2, kind: output, shape index: {}]  }
   0x1   :  { %9 = vsyncpa [#allocation3 + $0x1], 0  ;;  %s699_s9 = smov 0   ;;  %s701_s10 = smov 0  }
   0x2   :  { %s703_s11 = smov 0   ;;  %s705_s12 = smov 0  }
   0x3 LB: > { %s718_s13 = sadd.s32 4294967295, %s679_s12   ;;  %s721_s14 = sadd.s32 1, %s679_s12   ;;  %s679_s12 = sphi %s705_s12, %s837_s12   ;;  %s675_s11 = sphi %s703_s11, %s836_s11   ;;  %s671_s10 = sphi %s701_s10, %s835_s10   ;;  %s667_s9 = sphi %s699_s9, %s834_s9  }
   0x4   : > { %s40_s15 = ssub.s32 %s679_s12, %s721_s14  ;;  %s43_s16 = sadd.s32 1, %s675_s11 }
   0x5   : > { %p41_p0 = scmp.eq.s32.totalorder %s40_s15, 0  ;;  %p50_p1 = scmp.ne.s32.totalorder %s675_s11, %s671_s10 }
   0x6   : > { %p51_p2 = scmp.eq.s32.totalorder %s679_s12, 0  ;;  %p56_p3 = scmp.ne.s32.totalorder %s671_s10, %s667_s9 }
   0x7   : > { %s731_s17 = scalar_select %p41_p0, %s675_s11, %s43_s16  }
   0x8   : > { %p52_p4 = por %p51_p2, %p50_p1  ;;  %p57_p5 = scmp.eq.s32.totalorder %s718_s13, 0 }
   0x9   : > { %p577_p6 = scmp.lt.s32.totalorder %s679_s12, 2  ;;  %s109_s19 = sand.u32 1, %s675_s11  }
   0xa   : > { %p735_p7 = por %p57_p5, %p56_p3  ;;  %s535_s20 = sshll.u32 %s109_s19, 4 }
   0xb   : > { %s561_s21 = sshll.u32 %s679_s12, 8  ;;  %s113_s25 = scalar_lea.vmem [#allocation2], %s535_s20 }
   0xc   : > { %s744_s24 = scalar_lea.hbm %s828_s1, %s561_s21  ;;  %s121_s26 = sshll.u32 %s113_s25, 4  ;;  %s746_s26 = int_to_ptr.vmem [resolvable:$true] %s121_s26 }
   0xd   : > { %p748_p8 = pnand %p577_p6, %p52_p4  ;;  %s110_s28 = scalar_lea.sflag [#allocation3], %s109_s19 }
   0xe   : > { %s615_s29 = scalar_lea.hbm %s744_s24, 256  ;;  %s620_s4 = scalar_lea.hbm %s828_s1, 512 }
   0xf   : > { %p616_p11 = scmp.ne.s32.totalorder %s744_s24, %s615_s29  ;;  %p617_p12 = pneg %p748_p8 }
  0x10   : > { %p621_p1 = scmp.lt.u32.totalorder %s744_s24, %s828_s1  ;;  %p622_p2 = scmp.lt.u32.totalorder %s620_s4, %s615_s29 }
  0x11   : > { %p618_p13 = pnand %p617_p12, %p616_p11  ;;  %p624_p4 = scmp.lt.u32.totalorder %s615_s29, %s744_s24 }
  0x12   : > { %p623_p3 = por %p622_p2, %p621_p1 }
  0x13   : > { %p619_p0 = pneg %p618_p13 }
  0x14   : > { %p625_p5 = por %p624_p4, %p623_p3 }
  0x16   : > { %p626_p6 = pnand %p625_p5, %p619_p0 }
  0x18   : > { %629 = shalt.err (!%p626_p6)
}
  0x19   : > { %s630_s7 = scalar_lea.vmem %s746_s26, 256  ;;  %s681_s8 = smov [#allocation2]  }
  0x1a   : > { %p631_p11 = scmp.ne.s32.totalorder %s746_s26, %s630_s7  ;;  %s635_s9 = sshll.u32 %s681_s8, 4  ;;  %s636_s9 = int_to_ptr.vmem [resolvable:$false] %s635_s9 }
  0x1b   : > { %s637_s15 = scalar_lea.vmem %s636_s9, 512  ;;  %p638_p10 = scmp.lt.s32.totalorder %s746_s26, %s636_s9 }
  0x1c   : > { %p633_p13 = pnand %p631_p11, %p617_p12  ;;  %p639_p1 = scmp.lt.s32.totalorder %s637_s15, %s630_s7 }
  0x1e   : > { %p634_p9 = pneg %p633_p13  ;;  %p640_p2 = por %p639_p1, %p638_p10 }
  0x20   : > { %p641_p3 = pnand %p640_p2, %p634_p9 }
  0x22   : > { %644 = shalt.err (!%p641_p3)
}
  0x23   : > { %576 = dma.hbm_to_vmem [thread:$0]  (!%p748_p8), %s744_s24, 256, %s746_s26, %s110_s28  }
  0x24   : > { %p832_p0 = scmp.lt.s32.totalorder %s679_s12, 3  ;;  %p833_p4 = scmp.ge.s32.totalorder %s679_s12, 1 }
  0x26   : > { %p127_p12 = pnand %p833_p4, %p832_p0 }
  0x27   : > { %s132_s16 = sand.u32 (!%p127_p12), 1, %s671_s10  }
  0x28   : > { %130 = sbr.rel (%p127_p12) target bundleno = 289 (0x121), region = 28  ;;  %s539_s19 = sshll.u32 (!%p127_p12), %s132_s16, 4 }
  0x29   : > { %s133_s20 = scalar_lea.sflag (!%p127_p12), [#allocation3], %s132_s16  ;;  %s136_s21 = scalar_lea.vmem (!%p127_p12), [#allocation2], %s539_s19 }
  0x2f   : > { %662 = dma.done.wait (%p735_p7), %s133_s20, 256  }
  0x30   : > { %664 = vsyncadd (%p735_p7), %s133_s20, 4294967040  ;;  %v178_v0 = vlaneseq  ;;  %v682_v1 = vmov 1983009808   ;;  %v683_v3 = vmov 0   ;;  %v165_v7 = vld [vmem:[%s136_s21] sm:$0xff]  ;;  %vm212_vm0 = vcmask 1041408  }
  0x31   : > { %v176_v2 = vunpack.c.l.s4 %v682_v1  ;;  %269 = vmatprep.mubr.bf16.mxu0 %v683_v3  ;;  %312 = vmatprep.mubr.bf16.mxu1 %v683_v3  ;;  %v174_v9 = vcombine.high %v165_v7, %v165_v7  ;;  %v166_v10 = vld [vmem:[%s136_s21 + $0x8] sm:$0xff]  ;;  %v613_v20 = vld [vmem:[%s827_s0] sm:$0x1f]   ;;  %vm208_vm1 = vcmask 31744   ;;  %p157_p7 = scmp.lt.s32.totalorder %s718_s13, 1 }
  0x32   : > { %v179_v4 = vshrl.u32 %v178_v0, 7  ;;  %v191_v12 = vcombine.high %v166_v10, %v166_v10 }
  0x33   : > { %v177_v5 = vunpack.c.0.s8 %v176_v2  ;;  %s839_s13 = smov (!%p157_p7, %s718_s13), 1 }
  0x34   : > { %s562_s22 = sshll.u32 %s839_s13, 6 }
  0x35   : > { %v180_v6 = vsub.s32 %v177_v5, %v179_v4  ;;  %s804_s25 = scalar_lea.vmem %s829_s2, %s562_s22 }
  0x37   : > { %v181_v8 = vrot.slane %v165_v7, %v180_v6  ;;  %v198_v11 = vrot.slane %v166_v10, %v180_v6  ;;  %v188_v15 = vrot.slane %v174_v9, %v180_v6  ;;  %v205_v17 = vrot.slane %v191_v12, %v180_v6 }
  0x39   : > { %v189_v13 = vcombine.high %v181_v8, %v181_v8  ;;  %v214_v14 = vsel %vm212_vm0, %v181_v8, 0  ;;  %v206_v16 = vcombine.high %v198_v11, %v198_v11  ;;  %v190_v18 = vcombine.high %v188_v15, %v188_v15 }
  0x3a   : > { %v220_v19 = vsel %vm212_vm0, %v188_v15, 0  ;;  %v207_v21 = vcombine.high %v205_v17, %v205_v17  ;;  %v226_v22 = vsel %vm212_vm0, %v198_v11, 0  ;;  %v232_v23 = vsel %vm212_vm0, %v205_v17, 0 }
  0x3b   : > { %543 = vmatprep.subr.msk.bf16.mxu0 %vm212_vm0, %v189_v13  ;;  %545 = vmatprep.subr.msk.bf16.mxu1 %vm212_vm0, %v190_v18 }
  0x3c   : > { %238 = vmatpush1.bf16.msra.mxu0 %v214_v14  ;;  %281 = vmatpush1.bf16.msra.mxu1 %v220_v19 }
  0x3d   : > { %547 = vmatprep.subr.msk.bf16.mxu0 %vm212_vm0, %v206_v16  ;;  %549 = vmatprep.subr.msk.bf16.mxu1 %vm212_vm0, %v207_v21 }
  0x3f   : > { %544 = vmatmul.mubr.msk.bf16.vlgmr.msra.gmra.mrb[0].mxu0 %vm208_vm1, %v613_v20  ;;  %546 = vmatmul.mubr.msk.bf16.vlgmr.msra.gmra.mrb[0].mxu1 %vm208_vm1, %v613_v20 }
  0x40   : > { %324 = vmatpush1.bf16.msra.mxu0 %v226_v22  ;;  %355 = vmatprep.mubr.bf16.mxu0 %v683_v3 }
  0x41   : > { %367 = vmatpush1.bf16.msra.mxu1 %v232_v23  ;;  %398 = vmatprep.mubr.bf16.mxu1 %v683_v3 }
  0x47   : > { %548 = vmatmul.mubr.msk.bf16.vlgmr.msra.gmra.mrb[4].mxu0 %vm208_vm1, %v613_v20  ;;  %550 = vmatmul.mubr.msk.bf16.vlgmr.msra.gmra.mrb[4].mxu1 %vm208_vm1, %v613_v20 }
 0x112   : > { %v271_v24 = vpop.f32.mrb[0].mxu0  ;;  %v314_v28 = vpop.f32.mrb[0].mxu1 }
 0x113   : > { %v273_v25 = vpop.f32.mrb[1].mxu0  ;;  %v316_v30 = vpop.f32.mrb[1].mxu1 }
 0x114   : > { %v563_v26 = vpack.c.bf16 %v273_v25, %v271_v24  ;;  %v275_v27 = vpop.f32.mrb[2].mxu0  ;;  %v564_v32 = vpack.c.bf16 %v316_v30, %v314_v28  ;;  %v318_v33 = vpop.f32.mrb[2].mxu1 }
 0x115   : > { %v277_v29 = vpop.f32.mrb[3].mxu0  ;;  %v320_v34 = vpop.f32.mrb[3].mxu1 }
 0x116   : > { %457 = vst [vmem:[%s804_s25] sm:$0xff] %v563_v26  ;;  %v567_v31 = vpack.c.bf16 %v277_v29, %v275_v27  ;;  %458 = vst [vmem:[%s804_s25 + $0x8] sm:$0xff] %v564_v32  ;;  %v568_v35 = vpack.c.bf16 %v320_v34, %v318_v33 }
 0x118   : > { %461 = vst [vmem:[%s804_s25 + $0x20] sm:$0x11] %v567_v31  ;;  %462 = vst [vmem:[%s804_s25 + $0x28] sm:$0x11] %v568_v35 }
 0x11a   : > { %v357_v36 = vpop.f32.mrb[4].mxu0  ;;  %v400_v40 = vpop.f32.mrb[4].mxu1 }
 0x11b   : > { %v359_v37 = vpop.f32.mrb[5].mxu0  ;;  %v402_v42 = vpop.f32.mrb[5].mxu1 }
 0x11c   : > { %v565_v38 = vpack.c.bf16 %v359_v37, %v357_v36  ;;  %v361_v39 = vpop.f32.mrb[6].mxu0  ;;  %v566_v44 = vpack.c.bf16 %v402_v42, %v400_v40  ;;  %v404_v45 = vpop.f32.mrb[6].mxu1 }
 0x11d   : > { %v363_v41 = vpop.f32.mrb[7].mxu0  ;;  %v406_v46 = vpop.f32.mrb[7].mxu1 }
 0x11e   : > { %459 = vst [vmem:[%s804_s25 + $0x10] sm:$0xff] %v565_v38  ;;  %v569_v43 = vpack.c.bf16 %v363_v41, %v361_v39  ;;  %460 = vst [vmem:[%s804_s25 + $0x18] sm:$0xff] %v566_v44  ;;  %v570_v47 = vpack.c.bf16 %v406_v46, %v404_v45 }
 0x120   : > { %463 = vst [vmem:[%s804_s25 + $0x30] sm:$0x11] %v569_v43  ;;  %464 = vst [vmem:[%s804_s25 + $0x38] sm:$0x11] %v570_v47 }
 0x121 PF: > { %p12_p8 = scmp.ge.s32.totalorder %s721_s14, 4   ;;  %s834_s9 = smov %s671_s10 }
 0x122   : > { %s835_s10 = smov %s675_s11  ;;  %s836_s11 = smov %s731_s17 }
 0x123   : > { %s837_s12 = smov %s721_s14  ;;  %14 = sbr.rel (!%p12_p8) target bundleno = 3 (0x3), region = 68 }
 0x12a   :  { %486 = vsyncpa [#allocation3], 1 }
 0x12b   :  { %488 = vsyncpa [#allocation3 + $0x1], 1 }

</bundles_post_ra>
